<compile_context>
chip_gen: v7x
topology: tpu7x:2x2x1
jax: 0.10.0
libtpu: 0.0.40
codegen_flags: <defaults>
</compile_context>

<pallas_src>
import functools

import jax
import jax.numpy as jnp
from jax.experimental import pallas as pl
from jax.experimental.pallas import tpu as pltpu


def _attention_fusion_kernel(x_ref, w1_ref, b1_ref, w2_ref, b2_ref,
                             fused_ref, attn_ref,
                             *, num_views, embedding_dim, batch_tile):
    V, E, TB = num_views, embedding_dim, batch_tile

    x_in = x_ref[...]                               # (TB, V*E): views concatenated on lanes
    x_f32 = x_in.astype(jnp.float32)                # VPU math in f32 (v5e has no bf16 VPU)
    w1 = w1_ref[...]                                # (E, H), same dtype as x_in
    b1 = b1_ref[...]                                # (1, H) f32
    w2_row = w2_ref[...]                            # (1, H) f32
    b2 = b2_ref[0, 0]                               # scalar, read from SMEM

    # -- 1) attention scores per view: MXU matmul + tanh (EUP) + VPU lane-reduce ----
    score_cols = []
    for v in range(V):                              # V is small and static
        xv = x_in[:, v * E:(v + 1) * E]             # (TB, E) dense lane slice
        h = jnp.tanh(jnp.dot(xv, w1, preferred_element_type=jnp.float32) + b1)
        # second Linear has out_features=1: VPU multiply + lane reduce (no N=1 MXU op)
        score_cols.append(jnp.sum(h * w2_row, axis=-1, keepdims=True) + b2)   # (TB, 1)

    # -- 2) softmax over views, column-wise f32 (no scratch, no strided regroup) ----
    m = score_cols[0]
    for sv in score_cols[1:]:
        m = jnp.maximum(m, sv)
    e_cols = [jnp.exp(sv - m) for sv in score_cols]
    denom = e_cols[0]
    for ev in e_cols[1:]:
        denom = denom + ev
    inv = pl.reciprocal(denom, approx=False)        # exact reciprocal keeps check tight
    attn_cols = [ev * inv for ev in e_cols]         # V columns of shape (TB, 1)

    # -- 3) fused embedding: VPU weighted sum over dense per-view lane slabs --------
    fused = attn_cols[0] * x_f32[:, 0:E]
    for v in range(1, V):
        fused = fused + attn_cols[v] * x_f32[:, v * E:(v + 1) * E]
    fused_ref[...] = fused.astype(fused_ref.dtype)  # dense (TB, E) store

    # -- 4) assemble the (TB, V) attention-weight tile -------------------------------
    # NOTE: with V << 128 this store is lane-sparse, but it is a small fraction of
    # the HBM traffic (V*4 bytes/row vs V*E*4 read + E*4 written), so we accept it.
    col_ids = jax.lax.broadcasted_iota(jnp.int32, (TB, V), 1)
    attn = jnp.zeros((TB, V), jnp.float32)
    for v in range(V):
        attn = jnp.where(col_ids == v, attn_cols[v], attn)
    attn_ref[...] = attn.astype(attn_ref.dtype)


def _cdiv(a, b):
    return (a + b - 1) // b


def _round_up(a, m):
    return _cdiv(a, m) * m


def _choose_tiling(B, V, E, H, itemsize, batch_tile):
    """Pick (batch_tile, padded_batch, n_tiles, vmem_limit_bytes) from a VMEM budget."""
    vmem_target = 32 << 20                        # scoped budget safe on v5e/v6e/v7x
    # Double-buffered, per-batch-row bytes of the pipelined blocks:
    #   x tile (V*E), fused out tile (E, f32), attn out tile (lane-padded to 128, f32)
    row_bytes = 2 * (itemsize * V * E + 4 * E + 4 * 128)
    # Whole-array (single-buffered) resident weights.
    weight_bytes = itemsize * E * H + 4 * 2 * H
    if batch_tile is None:
        block_budget = max(vmem_target - weight_bytes - (4 << 20), 2 << 20)
        batch_tile = max(8, min(2048, (block_budget // row_bytes) // 8 * 8))
    B8 = _round_up(B, 8)
    n_tiles = _cdiv(B8, batch_tile)
    if n_tiles == 1 and B8 >= 128:
        n_tiles = 2                               # >=2 grid steps: lets v7x shard over 2 TCs
    tb = _round_up(_cdiv(B8, n_tiles), 8)         # near-equal tiles -> minimal tail padding
    b_pad = tb * n_tiles
    vmem_limit = int(max(vmem_target, (weight_bytes + tb * row_bytes) * 5 // 4))
    return tb, b_pad, n_tiles, vmem_limit


def attention_fusion(x, w1, b1, w2, b2, *, batch_tile=None, use_bf16=False):
    """x: (B, V, E); w1: (E, H); b1: (H,); w2: (H, 1); b2: (1,).

    Returns (fused_embedding (B, E) f32, attention_weights (B, V) f32).
    """
    B, V, E = x.shape
    H = w1.shape[1]
    in_dtype = jnp.bfloat16 if use_bf16 else jnp.float32
    itemsize = 2 if use_bf16 else 4

    TB, B_pad, n_tiles, vmem_limit = _choose_tiling(B, V, E, H, itemsize, batch_tile)

    x_p = x.astype(in_dtype)
    if B_pad != B:
        x_p = jnp.pad(x_p, ((0, B_pad - B), (0, 0), (0, 0)))
    x2 = x_p.reshape(B_pad, V * E)                # free reshape: views concat'd on lanes

    w1_c = w1.astype(in_dtype)
    b1_2d = b1.reshape(1, H).astype(jnp.float32)
    w2_row = w2.reshape(1, H).astype(jnp.float32)  # (H, 1) -> (1, H), same value order
    b2_2d = b2.reshape(1, 1).astype(jnp.float32)

    kernel = functools.partial(_attention_fusion_kernel, num_views=V,
                               embedding_dim=E, batch_tile=TB)

    grid_spec = pltpu.PrefetchScalarGridSpec(
        num_scalar_prefetch=0,
        grid=(n_tiles,),
        in_specs=[
            pl.BlockSpec((TB, V * E), lambda b: (b, 0)),            # pipelined x tile
            pl.BlockSpec(memory_space=pltpu.MemorySpace.VMEM),      # w1: resident, single-buffered
            pl.BlockSpec(memory_space=pltpu.MemorySpace.VMEM),      # b1
            pl.BlockSpec(memory_space=pltpu.MemorySpace.VMEM),      # w2 (as a row)
            pl.BlockSpec(memory_space=pltpu.MemorySpace.SMEM),      # b2 scalar
        ],
        out_specs=[
            pl.BlockSpec((TB, E), lambda b: (b, 0)),                # fused embedding
            pl.BlockSpec((TB, V), lambda b: (b, 0)),                # attention weights
        ],
    )

    fused, attn = pl.pallas_call(
        kernel,
        out_shape=(
            jax.ShapeDtypeStruct((B_pad, E), jnp.float32),
            jax.ShapeDtypeStruct((B_pad, V), jnp.float32),
        ),
        grid_spec=grid_spec,
        compiler_params=pltpu.CompilerParams(
            dimension_semantics=("parallel",),     # batch tiles shard across v7x's 2 TCs
            vmem_limit_bytes=vmem_limit,
        ),
    )(x2, w1_c, b1_2d, w2_row, b2_2d)

    if B_pad != B:
        fused = fused[:B]
        attn = attn[:B]
    return fused, attn


def reference(x, w1, b1, w2, b2):
    h = jnp.tanh(jnp.einsum("bve,eh->bvh", x, w1) + b1)
    scores = jnp.einsum("bvh,ho->bvo", h, w2) + b2        # (B, V, 1)
    attn = jax.nn.softmax(scores, axis=1)
    fused = jnp.sum(attn * x, axis=1)
    return fused, attn[..., 0]


if __name__ == "__main__":
    # Small shapes consistent with the module: batch=2, num_views=4, embedding_dim=32.
    B, V, E = 2, 4, 32
    H = E // 2      # hidden_dim default = embedding_dim // 2

    key = jax.random.PRNGKey(0)
    kx, kw1, kb1, kw2, kb2 = jax.random.split(key, 5)

    x = jax.random.normal(kx, (B, V, E), dtype=jnp.float32)
    # nn.Linear(E, H) / nn.Linear(H, 1) weights, stored transposed as (in, out).
    w1 = jax.random.normal(kw1, (E, H), dtype=jnp.float32) * 0.1
    b1 = jax.random.normal(kb1, (H,), dtype=jnp.float32) * 0.1
    w2 = jax.random.normal(kw2, (H, 1), dtype=jnp.float32) * 0.1
    b2 = jax.random.normal(kb2, (1,), dtype=jnp.float32) * 0.1

    fused, attn = attention_fusion(x, w1, b1, w2, b2)
    jax.block_until_ready((fused, attn))

    fused_ref, attn_ref = reference(x, w1, b1, w2, b2)
    # Tolerance covers the TPU MXU's default f32 matmul precision (bf16 passes),
    # which may differ between the in-kernel dot and the XLA reference einsum.
    assert jnp.allclose(attn, attn_ref, atol=2e-3, rtol=2e-3), "attn mismatch"
    assert jnp.allclose(fused, fused_ref, atol=2e-3, rtol=2e-3), "fused mismatch"
    # Self-consistency: softmax rows must sum to 1 (tight, reference-independent).
    assert jnp.allclose(jnp.sum(attn, axis=1), 1.0, atol=1e-5), "attn not normalized"
    assert fused.shape == (B, E) and attn.shape == (B, V)

    print("KERNEL_OK")
</pallas_src>

<mosaic_0001>
module attributes {stable_mosaic.version = 11 : i64} {
  func.func @_attention_fusion_kernel(%arg0: i32, %arg1: memref<8x128xf32, #tpu.memory_space<vmem>>, %arg2: memref<32x16xf32, #tpu.memory_space<vmem>>, %arg3: memref<1x16xf32, #tpu.memory_space<vmem>>, %arg4: memref<1x16xf32, #tpu.memory_space<vmem>>, %arg5: memref<1x1xf32, #tpu.memory_space<smem>>, %arg6: memref<8x32xf32, #tpu.memory_space<vmem>>, %arg7: memref<8x4xf32, #tpu.memory_space<vmem>>) attributes {dimension_semantics = [#tpu.dimension_semantics<parallel>], iteration_bounds = array<i64: 1>, scalar_prefetch = 0 : i64, scratch_operands = 0 : i64, tpu.core_type = #tpu.core_type<tc>, window_params = [{transform_indices = @transform_0, window_bounds = array<i64: 8, 128>}, {pipeline_mode = #tpu.pipeline_mode<synchronous>, transform_indices = @transform_1, window_bounds = array<i64: 32, 16>}, {pipeline_mode = #tpu.pipeline_mode<synchronous>, transform_indices = @transform_2, window_bounds = array<i64: 1, 16>}, {pipeline_mode = #tpu.pipeline_mode<synchronous>, transform_indices = @transform_3, window_bounds = array<i64: 1, 16>}, {transform_indices = @transform_4, window_bounds = array<i64: 1, 1>}, {transform_indices = @transform_5, window_bounds = array<i64: 8, 32>}, {transform_indices = @transform_6, window_bounds = array<i64: 8, 4>}]} {
    %c0 = arith.constant 0 : index
    %c0_0 = arith.constant 0 : index
    %0 = vector.load %arg1[%c0, %c0_0] : memref<8x128xf32, #tpu.memory_space<vmem>>, vector<8x128xf32>
    %c0_1 = arith.constant 0 : index
    %c0_2 = arith.constant 0 : index
    %1 = vector.load %arg2[%c0_1, %c0_2] : memref<32x16xf32, #tpu.memory_space<vmem>>, vector<32x16xf32>
    %c0_3 = arith.constant 0 : index
    %c0_4 = arith.constant 0 : index
    %2 = vector.load %arg3[%c0_3, %c0_4] : memref<1x16xf32, #tpu.memory_space<vmem>>, vector<1x16xf32>
    %c0_5 = arith.constant 0 : index
    %c0_6 = arith.constant 0 : index
    %3 = vector.load %arg4[%c0_5, %c0_6] : memref<1x16xf32, #tpu.memory_space<vmem>>, vector<1x16xf32>
    %c0_7 = arith.constant 0 : index
    %c0_8 = arith.constant 0 : index
    %4 = memref.load %arg5[%c0_7, %c0_8] : memref<1x1xf32, #tpu.memory_space<smem>>
    %5 = vector.extract_strided_slice %0 {offsets = [0, 0], sizes = [8, 32], strides = [1, 1]} : vector<8x128xf32> to vector<8x32xf32>
    %cst = arith.constant dense<0.000000e+00> : vector<8x16xf32>
    %6 = tpu.matmul %5, %1, %cst {dimension_numbers = #tpu.dot_dimension_numbers<[1], [0], [0], [1], [0, 0, 1, 1], [], []>} : vector<8x32xf32>, vector<32x16xf32>, vector<8x16xf32> -> vector<8x16xf32>
    %7 = vector.broadcast %2 : vector<1x16xf32> to vector<8x16xf32>
    %8 = arith.addf %6, %7 : vector<8x16xf32>
    %9 = math.tanh %8 : vector<8x16xf32>
    %10 = vector.broadcast %3 : vector<1x16xf32> to vector<8x16xf32>
    %11 = arith.mulf %9, %10 : vector<8x16xf32>
    %cst_9 = arith.constant dense<0.000000e+00> : vector<8xf32>
    %12 = vector.multi_reduction <add>, %11, %cst_9 [1] : vector<8x16xf32> to vector<8xf32>
    %13 = vector.shape_cast %12 : vector<8xf32> to vector<8x1xf32>
    %14 = vector.broadcast %4 : f32 to vector<8x1xf32>
    %15 = arith.addf %13, %14 : vector<8x1xf32>
    %16 = vector.extract_strided_slice %0 {offsets = [0, 32], sizes = [8, 32], strides = [1, 1]} : vector<8x128xf32> to vector<8x32xf32>
    %cst_10 = arith.constant dense<0.000000e+00> : vector<8x16xf32>
    %17 = tpu.matmul %16, %1, %cst_10 {dimension_numbers = #tpu.dot_dimension_numbers<[1], [0], [0], [1], [0, 0, 1, 1], [], []>} : vector<8x32xf32>, vector<32x16xf32>, vector<8x16xf32> -> vector<8x16xf32>
    %18 = vector.broadcast %2 : vector<1x16xf32> to vector<8x16xf32>
    %19 = arith.addf %17, %18 : vector<8x16xf32>
    %20 = math.tanh %19 : vector<8x16xf32>
    %21 = vector.broadcast %3 : vector<1x16xf32> to vector<8x16xf32>
    %22 = arith.mulf %20, %21 : vector<8x16xf32>
    %cst_11 = arith.constant dense<0.000000e+00> : vector<8xf32>
    %23 = vector.multi_reduction <add>, %22, %cst_11 [1] : vector<8x16xf32> to vector<8xf32>
    %24 = vector.shape_cast %23 : vector<8xf32> to vector<8x1xf32>
    %25 = vector.broadcast %4 : f32 to vector<8x1xf32>
    %26 = arith.addf %24, %25 : vector<8x1xf32>
    %27 = vector.extract_strided_slice %0 {offsets = [0, 64], sizes = [8, 32], strides = [1, 1]} : vector<8x128xf32> to vector<8x32xf32>
    %cst_12 = arith.constant dense<0.000000e+00> : vector<8x16xf32>
    %28 = tpu.matmul %27, %1, %cst_12 {dimension_numbers = #tpu.dot_dimension_numbers<[1], [0], [0], [1], [0, 0, 1, 1], [], []>} : vector<8x32xf32>, vector<32x16xf32>, vector<8x16xf32> -> vector<8x16xf32>
    %29 = vector.broadcast %2 : vector<1x16xf32> to vector<8x16xf32>
    %30 = arith.addf %28, %29 : vector<8x16xf32>
    %31 = math.tanh %30 : vector<8x16xf32>
    %32 = vector.broadcast %3 : vector<1x16xf32> to vector<8x16xf32>
    %33 = arith.mulf %31, %32 : vector<8x16xf32>
    %cst_13 = arith.constant dense<0.000000e+00> : vector<8xf32>
    %34 = vector.multi_reduction <add>, %33, %cst_13 [1] : vector<8x16xf32> to vector<8xf32>
    %35 = vector.shape_cast %34 : vector<8xf32> to vector<8x1xf32>
    %36 = vector.broadcast %4 : f32 to vector<8x1xf32>
    %37 = arith.addf %35, %36 : vector<8x1xf32>
    %38 = vector.extract_strided_slice %0 {offsets = [0, 96], sizes = [8, 32], strides = [1, 1]} : vector<8x128xf32> to vector<8x32xf32>
    %cst_14 = arith.constant dense<0.000000e+00> : vector<8x16xf32>
    %39 = tpu.matmul %38, %1, %cst_14 {dimension_numbers = #tpu.dot_dimension_numbers<[1], [0], [0], [1], [0, 0, 1, 1], [], []>} : vector<8x32xf32>, vector<32x16xf32>, vector<8x16xf32> -> vector<8x16xf32>
    %40 = vector.broadcast %2 : vector<1x16xf32> to vector<8x16xf32>
    %41 = arith.addf %39, %40 : vector<8x16xf32>
    %42 = math.tanh %41 : vector<8x16xf32>
    %43 = vector.broadcast %3 : vector<1x16xf32> to vector<8x16xf32>
    %44 = arith.mulf %42, %43 : vector<8x16xf32>
    %cst_15 = arith.constant dense<0.000000e+00> : vector<8xf32>
    %45 = vector.multi_reduction <add>, %44, %cst_15 [1] : vector<8x16xf32> to vector<8xf32>
    %46 = vector.shape_cast %45 : vector<8xf32> to vector<8x1xf32>
    %47 = vector.broadcast %4 : f32 to vector<8x1xf32>
    %48 = arith.addf %46, %47 : vector<8x1xf32>
    %49 = arith.maximumf %15, %26 : vector<8x1xf32>
    %50 = arith.maximumf %49, %37 : vector<8x1xf32>
    %51 = arith.maximumf %50, %48 : vector<8x1xf32>
    %52 = arith.subf %15, %51 : vector<8x1xf32>
    %53 = math.exp %52 : vector<8x1xf32>
    %54 = arith.subf %26, %51 : vector<8x1xf32>
    %55 = math.exp %54 : vector<8x1xf32>
    %56 = arith.subf %37, %51 : vector<8x1xf32>
    %57 = math.exp %56 : vector<8x1xf32>
    %58 = arith.subf %48, %51 : vector<8x1xf32>
    %59 = math.exp %58 : vector<8x1xf32>
    %60 = arith.addf %53, %55 : vector<8x1xf32>
    %61 = arith.addf %60, %57 : vector<8x1xf32>
    %62 = arith.addf %61, %59 : vector<8x1xf32>
    %63 = tpu.reciprocal %62 : vector<8x1xf32> -> vector<8x1xf32>
    %64 = arith.mulf %53, %63 : vector<8x1xf32>
    %65 = arith.mulf %55, %63 : vector<8x1xf32>
    %66 = arith.mulf %57, %63 : vector<8x1xf32>
    %67 = arith.mulf %59, %63 : vector<8x1xf32>
    %68 = vector.extract_strided_slice %0 {offsets = [0, 0], sizes = [8, 32], strides = [1, 1]} : vector<8x128xf32> to vector<8x32xf32>
    %69 = vector.broadcast %64 : vector<8x1xf32> to vector<8x32xf32>
    %70 = arith.mulf %69, %68 : vector<8x32xf32>
    %71 = vector.extract_strided_slice %0 {offsets = [0, 32], sizes = [8, 32], strides = [1, 1]} : vector<8x128xf32> to vector<8x32xf32>
    %72 = vector.broadcast %65 : vector<8x1xf32> to vector<8x32xf32>
    %73 = arith.mulf %72, %71 : vector<8x32xf32>
    %74 = arith.addf %70, %73 : vector<8x32xf32>
    %75 = vector.extract_strided_slice %0 {offsets = [0, 64], sizes = [8, 32], strides = [1, 1]} : vector<8x128xf32> to vector<8x32xf32>
    %76 = vector.broadcast %66 : vector<8x1xf32> to vector<8x32xf32>
    %77 = arith.mulf %76, %75 : vector<8x32xf32>
    %78 = arith.addf %74, %77 : vector<8x32xf32>
    %79 = vector.extract_strided_slice %0 {offsets = [0, 96], sizes = [8, 32], strides = [1, 1]} : vector<8x128xf32> to vector<8x32xf32>
    %80 = vector.broadcast %67 : vector<8x1xf32> to vector<8x32xf32>
    %81 = arith.mulf %80, %79 : vector<8x32xf32>
    %82 = arith.addf %78, %81 : vector<8x32xf32>
    %c0_16 = arith.constant 0 : index
    %c0_17 = arith.constant 0 : index
    %83 = vector.load %arg6[%c0_16, %c0_17] : memref<8x32xf32, #tpu.memory_space<vmem>>, vector<8x32xf32>
    tpu.vector_store %arg6[%c0_16, %c0_17], %82 {strides = array<i32>} : memref<8x32xf32, #tpu.memory_space<vmem>>, vector<8x32xf32>,
    %84 = tpu.iota {dimensions = array<i32: 1>} : vector<8x4xi32>
    %cst_18 = arith.constant 0.000000e+00 : f32
    %85 = vector.broadcast %cst_18 : f32 to vector<8x4xf32>
    %c0_i32 = arith.constant 0 : i32
    %86 = vector.broadcast %c0_i32 : i32 to vector<8x4xi32>
    %87 = arith.cmpi eq, %84, %86 : vector<8x4xi32>
    %88 = vector.shape_cast %64 : vector<8x1xf32> to vector<8x1xf32>
    %89 = vector.broadcast %88 : vector<8x1xf32> to vector<8x4xf32>
    %90 = arith.select %87, %89, %85 : vector<8x4xi1>, vector<8x4xf32>
    %c1_i32 = arith.constant 1 : i32
    %91 = vector.broadcast %c1_i32 : i32 to vector<8x4xi32>
    %92 = arith.cmpi eq, %84, %91 : vector<8x4xi32>
    %93 = vector.shape_cast %65 : vector<8x1xf32> to vector<8x1xf32>
    %94 = vector.broadcast %93 : vector<8x1xf32> to vector<8x4xf32>
    %95 = arith.select %92, %94, %90 : vector<8x4xi1>, vector<8x4xf32>
    %c2_i32 = arith.constant 2 : i32
    %96 = vector.broadcast %c2_i32 : i32 to vector<8x4xi32>
    %97 = arith.cmpi eq, %84, %96 : vector<8x4xi32>
    %98 = vector.shape_cast %66 : vector<8x1xf32> to vector<8x1xf32>
    %99 = vector.broadcast %98 : vector<8x1xf32> to vector<8x4xf32>
    %100 = arith.select %97, %99, %95 : vector<8x4xi1>, vector<8x4xf32>
    %c3_i32 = arith.constant 3 : i32
    %101 = vector.broadcast %c3_i32 : i32 to vector<8x4xi32>
    %102 = arith.cmpi eq, %84, %101 : vector<8x4xi32>
    %103 = vector.shape_cast %67 : vector<8x1xf32> to vector<8x1xf32>
    %104 = vector.broadcast %103 : vector<8x1xf32> to vector<8x4xf32>
    %105 = arith.select %102, %104, %100 : vector<8x4xi1>, vector<8x4xf32>
    %c0_19 = arith.constant 0 : index
    %c0_20 = arith.constant 0 : index
    %106 = vector.load %arg7[%c0_19, %c0_20] : memref<8x4xf32, #tpu.memory_space<vmem>>, vector<8x4xf32>
    tpu.vector_store %arg7[%c0_19, %c0_20], %105 {strides = array<i32>} : memref<8x4xf32, #tpu.memory_space<vmem>>, vector<8x4xf32>,
    return
  }
  func.func @transform_0(%arg0: i32) -> (i32, i32) {
    %c0_i32 = arith.constant 0 : i32
    %c0_i32_0 = arith.constant 0 : i32
    return %arg0, %c0_i32 : i32, i32
  }
  func.func @transform_1(%arg0: i32) -> (i32, i32) {
    %c0_i32 = arith.constant 0 : i32
    %c0_i32_0 = arith.constant 0 : i32
    %c0_i32_1 = arith.constant 0 : i32
    return %c0_i32, %c0_i32_0 : i32, i32
  }
  func.func @transform_2(%arg0: i32) -> (i32, i32) {
    %c0_i32 = arith.constant 0 : i32
    %c0_i32_0 = arith.constant 0 : i32
    %c0_i32_1 = arith.constant 0 : i32
    return %c0_i32, %c0_i32_0 : i32, i32
  }
  func.func @transform_3(%arg0: i32) -> (i32, i32) {
    %c0_i32 = arith.constant 0 : i32
    %c0_i32_0 = arith.constant 0 : i32
    %c0_i32_1 = arith.constant 0 : i32
    return %c0_i32, %c0_i32_0 : i32, i32
  }
  func.func @transform_4(%arg0: i32) -> (i32, i32) {
    %c0_i32 = arith.constant 0 : i32
    %c0_i32_0 = arith.constant 0 : i32
    %c0_i32_1 = arith.constant 0 : i32
    return %c0_i32, %c0_i32_0 : i32, i32
  }
  func.func @transform_5(%arg0: i32) -> (i32, i32) {
    %c0_i32 = arith.constant 0 : i32
    %c0_i32_0 = arith.constant 0 : i32
    return %arg0, %c0_i32 : i32, i32
  }
  func.func @transform_6(%arg0: i32) -> (i32, i32) {
    %c0_i32 = arith.constant 0 : i32
    %c0_i32_0 = arith.constant 0 : i32
    return %arg0, %c0_i32 : i32, i32
  }
}

</mosaic_0001>

<bundles_post_ra>
// kernel: tpu_custom_call.1
= control target key start
LH: loop header
LB: loop body
LE: loop exit
PB: predicated region body
PF: predicated region fallthrough
CT: control target
= control target key end

     0   :  { %s582_s27 = smov 96   ;;  %v583_v3 = vmov 0.0|0.0   ;;  %s584_s7 = smov 32   ;;  %s692_s0 = inlined_call_operand.vmem [shape: f32[8,128], index: 0, kind: input, shape index: {}]   ;;  %s693_s1 = inlined_call_operand.vmem [shape: f32[32,16], index: 1, kind: input, shape index: {}]   ;;  %s694_s2 = inlined_call_operand.vmem [shape: f32[1,16], index: 2, kind: input, shape index: {}]   ;;  %s695_s3 = inlined_call_operand.vmem [shape: f32[1,16], index: 3, kind: input, shape index: {}]   ;;  %s696_s4 = inlined_call_operand.<no memory space> [shape: f32[1,1], index: 4, kind: input, shape index: {}]   ;;  %s697_s5 = inlined_call_operand.hbm [shape: f32[8,32], index: 5, kind: output, shape index: {0}]   ;;  %s698_s6 = inlined_call_operand.vmem [shape: f32[8,4], index: 6, kind: output, shape index: {1}]  }
   0x1   :  { %v627_v0 = vld [vmem:[%s692_s0] sm:$0xff]  ;;  %v26_v2 = vld [vmem:[%s693_s1 + $0x8] sm:$0xff]  ;;  %509 = vmatprep.subr.bf16.mxu0 %v583_v3  ;;  %v27_v5 = vld [vmem:[%s693_s1 + $0x10] sm:$0xff]  ;;  %515 = vmatprep.subr.bf16.mxu1 %v583_v3 }
   0x2   :  { %v25_v1 = vld [vmem:[%s693_s1] sm:$0xff]  ;;  %126 = vrot.lane.b32.xlu0 %v627_v0, %s582_s27  ;;  %v28_v6 = vld [vmem:[%s693_s1 + $0x18] sm:$0xff]  ;;  %286 = vrot.lane.b32.xlu1 %v627_v0, %s584_s7 }
   0x3   :  { %v510_v4 = vpack.c.bf16 %v26_v2, %v25_v1 }
   0x4   :  { %13 = vsyncpa [#allocation4], 0  ;;  %v513_v7 = vpack.c.bf16 %v28_v6, %v27_v5  ;;  %s585_s8 = smov 64   ;;  %vm586_vm0 = vmmov 0   ;;  %v587_v8 = vmov 0.0   ;;  %vm38_vm1 = vcmask 261120  }
   0x5   :  { %511 = vmatpush3.bf16.msra.mxu0 %v510_v4  ;;  %517 = vmatpush3.bf16.msra.mxu1 %v510_v4  ;;  %v439_v12 = vld [vmem:[%s694_s2] ss:$0 sm:$0xff]  ;;  %vm120_vm2 = vcmask 130048   ;;  %v124_v38 = vstv %s696_s4  ;;  %v409_v2 = vlaneseq  ;;  %vm419_vm7 = vcmask 31744   ;;  %s588_s13 = smov [#allocation3]  }
   0x6   :  { %512 = vmatprep.subr.bf16.mxu0 %v583_v3  ;;  %518 = vmatprep.subr.bf16.mxu1 %v583_v3  ;;  %v441_v16 = vld [vmem:[%s695_s3] ss:$0 sm:$0xff]  ;;  %s427_s14 = sshll.u32 %s588_s13, 4  ;;  %s428_s14 = int_to_ptr.vmem [resolvable:$true] %s427_s14 }
   0x7   :  { %206 = vrot.lane.b32.xlu0 %v627_v0, %s585_s8  ;;  %473 = vmatprep.mubr.msk.f32.mxu0 %vm586_vm0, %v587_v8  ;;  %s558_s15 = scalar_lea.vmem %s428_s14, 128  ;;  %p563_p1 = scmp.lt.s32.totalorder %s428_s14, %s428_s14 }
   0x8   :  { %484 = vmatprep.mubr.msk.f32.mxu1 %vm586_vm0, %v587_v8  ;;  %p559_p0 = scmp.ne.s32.totalorder %s428_s14, %s558_s15  ;;  %p564_p2 = scmp.lt.s32.totalorder %s558_s15, %s558_s15 }
   0x9   :  { %514 = vmatpush3.bf16.msra.mxu0 %v513_v7  ;;  %520 = vmatpush3.bf16.msra.mxu1 %v513_v7 }
   0xa   :  { %521 = vmatprep.subr.bf16.mxu0 %v583_v3  ;;  %527 = vmatprep.subr.bf16.mxu1 %v583_v3  ;;  %p565_p3 = por %p564_p2, %p563_p1 }
   0xc   :  { %474 = vmatmul.mubr.msk.f32.vlgmr.msra.gmra.mrb[0].mxu0 %vm38_vm1, %v627_v0  ;;  %p566_p4 = pnand %p565_p3, %p559_p0 }
   0xd   :  { %523 = vmatpush3.bf16.msra.mxu0 %v510_v4  ;;  %495 = vmatprep.mubr.msk.f32.mxu0 %vm586_vm0, %v587_v8 }
   0xe   :  { %524 = vmatprep.subr.bf16.mxu0 %v583_v3 }
  0x11   :  { %526 = vmatpush3.bf16.msra.mxu0 %v513_v7 }
  0x74   :  { %v127_v9 = vpop.permute.xlu0 %126  ;;  %v287_v11 = vpop.permute.xlu1 %286 }
  0x75   :  { %485 = vmatmul.mubr.msk.f32.vlgmr.msra.gmra.mrb[0].mxu1 %vm38_vm1, %v127_v9 }
  0x76   :  { %529 = vmatpush3.bf16.msra.mxu1 %v510_v4  ;;  %506 = vmatprep.mubr.msk.f32.mxu1 %vm586_vm0, %v587_v8 }
  0x77   :  { %530 = vmatprep.subr.bf16.mxu1 %v583_v3  ;;  %v410_v3 = vand.u32 127, %v409_v2 }
  0x79   :  { %v207_v10 = vpop.permute.xlu0 %206  ;;  %vm411_vm3 = vcmp.eq.s32.totalorder %v410_v3, 0  ;;  %vm413_vm4 = vcmp.eq.s32.totalorder %v410_v3, 1  ;;  %vm415_vm5 = vcmp.eq.s32.totalorder %v410_v3, 2  ;;  %vm417_vm6 = vcmp.eq.s32.totalorder %v410_v3, 3 }
  0x7a   :  { %496 = vmatmul.mubr.msk.f32.vlgmr.msra.gmra.mrb[2].mxu0 %vm38_vm1, %v207_v10  ;;  %532 = vmatpush3.bf16.msra.mxu1 %v513_v7 }
  0x7d   :  { %507 = vmatmul.mubr.msk.f32.vlgmr.msra.gmra.mrb[2].mxu1 %vm38_vm1, %v287_v11 }
  0xdf   :  { %v108_v13 = vpop.f32.mrb[0].mxu0 }
  0xe0   :  { %v109_v14 = vadd.f32 %v439_v12, %v108_v13  ;;  %v475_v15 = vpop.f32.mrb[1].mxu0 }
  0xe2   :  { %540 = vtanh.f32 %v109_v14 }
  0xec   :  { %v541_v17 = vpop.eup %540 }
  0xed   :  { %v119_v18 = vmul.f32 %v541_v17, %v441_v16 }
  0xef   :  { %v121_v19 = vsel %vm120_vm2, %v119_v18, 0.0 }
  0xf0   :  { %122 = vadd.xlane.f32.xlu1 %v121_v19 }
 0x148   :  { %v196_v20 = vpop.f32.mrb[0].mxu1 }
 0x149   :  { %v197_v21 = vadd.f32 %v439_v12, %v196_v20  ;;  %v486_v22 = vpop.f32.mrb[1].mxu1 }
 0x14b   :  { %542 = vtanh.f32 %v197_v21 }
 0x14d   :  { %v276_v23 = vpop.f32.mrb[2].mxu0 }
 0x14e   :  { %v277_v24 = vadd.f32 %v439_v12, %v276_v23  ;;  %v497_v25 = vpop.f32.mrb[3].mxu0 }
 0x150   :  { %544 = vtanh.f32 %v277_v24  ;;  %v356_v26 = vpop.f32.mrb[2].mxu1 }
 0x151   :  { %v357_v27 = vadd.f32 %v439_v12, %v356_v26  ;;  %v508_v28 = vpop.f32.mrb[3].mxu1 }
 0x153   :  { %546 = vtanh.f32 %v357_v27 }
 0x155   :  { %v543_v29 = vpop.eup %542 }
 0x156   :  { %v201_v30 = vmul.f32 %v543_v29, %v441_v16 }
 0x158   :  { %v202_v31 = vsel %vm120_vm2, %v201_v30, 0.0 }
 0x159   :  { %203 = vadd.xlane.f32.xlu0 %v202_v31 }
 0x15a   :  { %v545_v32 = vpop.eup %544 }
 0x15b   :  { %v281_v33 = vmul.f32 %v545_v32, %v441_v16 }
 0x15d   :  { %v282_v34 = vsel %vm120_vm2, %v281_v33, 0.0  ;;  %v547_v35 = vpop.eup %546 }
 0x15e   :  { %283 = vadd.xlane.f32.xlu0 %v282_v34  ;;  %v361_v36 = vmul.f32 %v547_v35, %v441_v16 }
 0x160   :  { %v362_v37 = vsel %vm120_vm2, %v361_v36, 0.0 }
 0x161   :  { %363 = vadd.xlane.f32.xlu1 %v362_v37 }
 0x17d   :  { %v123_v39 = vpop.xlane.xlu1 %122 }
 0x17e   :  { %v125_v42 = vadd.f32 %v124_v38, %v123_v39 }
 0x1e6   :  { %v204_v40 = vpop.xlane.xlu0 %203 }
 0x1e7   :  { %v205_v41 = vadd.f32 %v204_v40, %v124_v38 }
 0x1e9   :  { %v366_v44 = vmax.f32 %v125_v42, %v205_v41 }
 0x1eb   :  { %v284_v43 = vpop.xlane.xlu0 %283 }
 0x1ec   :  { %v285_v45 = vadd.f32 %v284_v43, %v124_v38 }
 0x1ee   :  { %v367_v46 = vmax.f32 %v366_v44, %v285_v45  ;;  %v364_v47 = vpop.xlane.xlu1 %363 }
 0x1ef   :  { %v365_v48 = vadd.f32 %v364_v47, %v124_v38 }
 0x1f1   :  { %v368_v49 = vmax.f32 %v367_v46, %v365_v48 }
 0x1f3   :  { %v369_v50 = vsub.f32 %v125_v42, %v368_v49  ;;  %v372_v51 = vsub.f32 %v205_v41, %v368_v49  ;;  %v375_v52 = vsub.f32 %v285_v45, %v368_v49  ;;  %v378_v53 = vsub.f32 %v365_v48, %v368_v49 }
 0x1f5   :  { %v370_v54 = vmul.f32 1.442695, %v369_v50  ;;  %v373_v55 = vmul.f32 1.442695, %v372_v51  ;;  %v376_v56 = vmul.f32 1.442695, %v375_v52 }
 0x1f6   :  { %v379_v57 = vmul.f32 1.442695, %v378_v53 }
 0x1f7   :  { %548 = vpow2.f32 %v370_v54 }
 0x1f8   :  { %550 = vpow2.f32 %v373_v55 }
 0x1f9   :  { %552 = vpow2.f32 %v376_v56 }
 0x1fa   :  { %554 = vpow2.f32 %v379_v57 }
 0x201   :  { %v549_v58 = vpop.eup %548 }
 0x202   :  { %v551_v59 = vpop.eup %550 }
 0x203   :  { %v381_v60 = vadd.f32 %v551_v59, %v549_v58  ;;  %v553_v61 = vpop.eup %552 }
 0x204   :  { %v555_v63 = vpop.eup %554 }
 0x205   :  { %v382_v62 = vadd.f32 %v553_v61, %v381_v60 }
 0x207   :  { %v383_v1 = vadd.f32 %v555_v63, %v382_v62 }
 0x209   :  { %556 = vrcp.f32 %v383_v1 }
 0x213   :  { %v557_v4 = vpop.eup %556 }
 0x214   :  { %v387_v5 = vmul.f32 %v557_v4, %v553_v61  ;;  %v386_v6 = vmul.f32 %v557_v4, %v551_v59  ;;  %v385_v7 = vmul.f32 %v557_v4, %v549_v58  ;;  %v388_v10 = vmul.f32 %v557_v4, %v555_v63 }
 0x216   :  { %v396_v8 = vmul.f32 %v387_v5, %v627_v0  ;;  %v390_v9 = vmul.f32 %v386_v6, %v627_v0  ;;  %v412_v11 = vsel %vm411_vm3, %v385_v7, 0.0  ;;  %v402_v14 = vmul.f32 %v388_v10, %v627_v0 }
 0x217   :  { %v414_v12 = vsel %vm413_vm4, %v386_v6, %v412_v11  ;;  %v389_v16 = vmul.f32 %v385_v7, %v627_v0 }
 0x218   :  { %398 = vrot.lane.b32.xlu1 %v396_v8, %s585_s8  ;;  %392 = vrot.lane.b32.xlu0 %v390_v9, %s582_s27  ;;  %v416_v13 = vsel %vm415_vm5, %v387_v5, %v414_v12 }
 0x219   :  { %v418_v15 = vsel %vm417_vm6, %v388_v10, %v416_v13 }
 0x21a   :  { %420 = vst.msk [vmem:[%s698_s6] sm:$0xff] %vm419_vm7, %v418_v15 }
 0x21c   :  { %404 = vrot.lane.b32.xlu1 %v402_v14, %s584_s7 }
 0x28a   :  { %v399_v17 = vpop.permute.xlu1 %398  ;;  %v393_v18 = vpop.permute.xlu0 %392 }
 0x28b   :  { %v395_v19 = vadd.f32 %v393_v18, %v389_v16 }
 0x28d   :  { %v401_v20 = vadd.f32 %v399_v17, %v395_v19 }
 0x28e   :  { %v405_v21 = vpop.permute.xlu1 %404 }
 0x28f   :  { %v407_v22 = vadd.f32 %v405_v21, %v401_v20 }
 0x291   :  { %408 = vst.msk [vmem:[#allocation3] sm:$0xff] %vm38_vm1, %v407_v22 }
 0x292   :  { %569 = shalt.err (!%p566_p4)
}
 0x293   :  { %s570_s17 = scalar_lea.hbm %s697_s5, 128 }
 0x294   :  { %p571_p5 = scmp.ne.s32.totalorder %s697_s5, %s570_s17  ;;  %p574_p6 = scmp.lt.u32.totalorder %s570_s17, %s697_s5 }
 0x296   :  { %p576_p7 = pnand %p574_p6, %p571_p5 }
 0x298   :  { %579 = shalt.err (!%p576_p7)
}
 0x299   :  { %430 = dma.vmem_to_hbm [thread:$0]  %s428_s14, 128, %s697_s5, [#allocation4]  }
 0x29a   :  { %580 = dma.done.wait [#allocation4], 128  }
 0x29b   :  { %581 = vsyncadd [#allocation4], 4294967168 }
 0x29c   :  { %438 = vsyncpa [#allocation4], 1 }

</bundles_post_ra>
